<compile_context>
chip_gen: v6e
topology: v6e:2x2x1
jax: 0.10.0
libtpu: 0.0.40
codegen_flags: <defaults>
</compile_context>

<pallas_src>
import math

import jax
import jax.numpy as jnp
from jax.experimental import pallas as pl
from jax.experimental.pallas import tpu as pltpu


def hook_point_kernel(x_hbm_ref, o_hbm_ref, sem):
    """Identity: one async DMA copying the whole input HBM buffer to the output."""
    copy = pltpu.make_async_copy(x_hbm_ref, o_hbm_ref, sem)
    copy.start()
    copy.wait()


def _identity_pallas(x):
    """Whole-array HBM->HBM copy; no grid, no VMEM residency requirement."""
    return pl.pallas_call(
        hook_point_kernel,
        out_shape=jax.ShapeDtypeStruct(x.shape, x.dtype),
        in_specs=[pl.BlockSpec(memory_space=pl.ANY)],
        out_specs=pl.BlockSpec(memory_space=pl.ANY),
        scratch_shapes=[pltpu.SemaphoreType.DMA(())],
    )(x)


def hook_point_forward(x):
    """HookPoint.forward: identity, via a single HBM->HBM DMA Pallas kernel."""
    x = jnp.asarray(x)
    n = math.prod(x.shape) if x.ndim else 1
    if n == 0:
        # Nothing to copy; the identity of an empty array is itself.
        return x
    if x.ndim < 2:
        # Guard rank-0 / rank-1 inputs: present a 2-D buffer to the TPU DMA.
        out = _identity_pallas(x.reshape(1, max(n, 1)))
        return out.reshape(x.shape)
    return _identity_pallas(x)


class HookPoint:
    """Host-side mirror of the PyTorch HookPoint API around the Pallas kernel.

    Forward hooks run host-side on the kernel output as hook(output, name=...),
    matching `full_hook` in the original module; a non-None return value
    replaces the output (PyTorch forward-hook semantics).
    """

    def __init__(self):
        self.fwd_hooks = []
        self.bwd_hooks = []
        self.name = None

    def give_name(self, name):
        self.name = name

    def add_hook(self, hook, dir="fwd"):
        if dir == "fwd":
            self.fwd_hooks.append(hook)
        elif dir == "bwd":
            # TODO(synk): backward (autograd) hooks have no equivalent in a
            # forward-only Pallas kernel; stored but never invoked.
            self.bwd_hooks.append(hook)
        else:
            raise ValueError(f"Invalid direction {dir}")

    def remove_hooks(self, dir="fwd"):
        if dir not in ("fwd", "bwd", "both"):
            raise ValueError(f"Invalid direction {dir}")
        if dir in ("fwd", "both"):
            self.fwd_hooks = []
        if dir in ("bwd", "both"):
            self.bwd_hooks = []

    def __call__(self, x):
        return self.forward(x)

    def forward(self, x):
        out = hook_point_forward(x)
        for hook in self.fwd_hooks:
            maybe = hook(out, name=self.name)
            if maybe is not None:
                out = maybe
        return out


if __name__ == "__main__":
    key = jax.random.PRNGKey(0)
    # Shape consistent with how HookPoint is used inside the transformer:
    # an activation of shape (batch, seq, d_model) = (2, 8, 32).
    x = jax.random.normal(key, (2, 8, 32), jnp.float32)

    hp = HookPoint()
    hp.give_name("blocks.0.hook_resid_pre")

    captured = {}

    def capture(tensor, name=None):
        captured[name] = tensor  # returns None -> output passes through unchanged

    hp.add_hook(capture, dir="fwd")

    out = hp(x)
    out = jax.block_until_ready(out)

    assert out.shape == x.shape
    assert out.dtype == x.dtype
    assert jnp.array_equal(out, x), "HookPoint forward must be the identity"
    assert "blocks.0.hook_resid_pre" in captured
    assert jnp.array_equal(captured["blocks.0.hook_resid_pre"], x)

    # Exercise the rank guard as well (1-D activation).
    v = jax.random.normal(jax.random.PRNGKey(1), (37,), jnp.float32)
    v_out = jax.block_until_ready(hp(v))
    assert v_out.shape == v.shape
    assert jnp.array_equal(v_out, v)

    hp.remove_hooks("both")
    assert hp.fwd_hooks == [] and hp.bwd_hooks == []

    print("KERNEL_OK")
</pallas_src>

<mosaic_0001>
module attributes {stable_mosaic.version = 11 : i64} {
  func.func @hook_point_kernel(%arg0: memref<2x8x32xf32, #tpu.memory_space<any>>, %arg1: memref<2x8x32xf32, #tpu.memory_space<any>>, %arg2: memref<!tpu.dma_semaphore, #tpu.memory_space<semaphore_mem>>) attributes {dimension_semantics = [], scalar_prefetch = 0 : i64, scratch_operands = 1 : i64, tpu.core_type = #tpu.core_type<tc>} {
    tpu.enqueue_dma source(%arg0 : memref<2x8x32xf32, #tpu.memory_space<any>>) target(%arg1 : memref<2x8x32xf32, #tpu.memory_space<any>>) target_semaphore(%arg2 : memref<!tpu.dma_semaphore, #tpu.memory_space<semaphore_mem>>)
    tpu.wait_dma2 semaphore(%arg2 : memref<!tpu.dma_semaphore, #tpu.memory_space<semaphore_mem>>) src(%arg0 : memref<2x8x32xf32, #tpu.memory_space<any>>) dst(%arg1 : memref<2x8x32xf32, #tpu.memory_space<any>>)
    return
  }
}

</mosaic_0001>

<bundles_post_ra>
// kernel: tpu_custom_call.1
= control target key start
LH: loop header
LB: loop body
LE: loop exit
PB: predicated region body
PF: predicated region fallthrough
CT: control target
= control target key end

     0   :  { %s29_s6 = smov [#allocation2]   ;;  %s30_s7 = smov 131072   ;;  %s48_s0 = inlined_call_operand.hbm [shape: f32[2,8,32], index: 0, kind: input, shape index: {}]   ;;  %s49_s1 = inlined_call_operand.hbm [shape: f32[2,8,32], index: 1, kind: output, shape index: {}]  }
   0x1   :  { %s31_s8 = smov 0  }
   0x2   :  { %12 = dma.general %s48_s0, 256, %s49_s1, %s29_s6, %s30_s7, [#allocation4], %s31_s8, 0  }
   0x3   :  { %27 = dma.done.wait [#allocation2], 256 }
   0x4   :  { %28 = vsyncadd [#allocation2], 4294967040 }
   0x5   :  { %17 = vsyncmov [#allocation2] }
   0x8   :  { %s18_s13 = vpop.sfrf %17 }
   0x9   :  { %p23_p0 = scmp.ne.s32.totalorder %s18_s13, 0 }
   0xb   :  { %22 = shalt.err (%p23_p0)  }

</bundles_post_ra>
